<compile_context>
chip_gen: v7x
topology: tpu7x:2x2x1
jax: 0.10.0
libtpu: 0.0.40
codegen_flags: <defaults>
</compile_context>

<pallas_src>
import math

import jax
import jax.numpy as jnp
from jax.experimental import pallas as pl
from jax.experimental.pallas import tpu as pltpu

EPS = 1e-5  # nn.LayerNorm default


# ----------------------------- in-kernel helpers -----------------------------

def _layernorm(x, gamma, beta):
    # x: (T, C) f32; gamma/beta: (1, C) f32. Biased variance, as in nn.LayerNorm.
    mean = jnp.mean(x, axis=-1, keepdims=True)
    var = jnp.mean((x - mean) ** 2, axis=-1, keepdims=True)
    return (x - mean) * jax.lax.rsqrt(var + EPS) * gamma + beta


def _gelu_exact(x):
    # nn.GELU() default = exact erf-based GELU.
    # TODO(synk): switch to tanh-approx GELU on v5e if a bundle dump shows the
    # single EUP slot binding in the MLP.
    return 0.5 * x * (1.0 + jax.lax.erf(x * (1.0 / math.sqrt(2.0))))


# ------------------------------ sizing helpers --------------------------------

def _physical_vmem_bytes():
    try:
        return int(pltpu.get_tpu_info().vmem_capacity_bytes)
    except Exception:
        return 64 << 20  # conservative default: v7x per-TensorCore VMEM


def _vmem_limit(streamed_bytes, resident_bytes, inkernel_bytes):
    """Scoped-VMEM request: 2x double-buffered streamed operands, 1x resident
    (single-buffered) weights, plus in-kernel intermediates and headroom.
    Never exceeds physical VMEM (64 MiB on v7x) minus compiler headroom."""
    need = int(2 * streamed_bytes + resident_bytes + inkernel_bytes) + (8 << 20)
    cap = _physical_vmem_bytes() - (8 << 20)
    return int(min(max(need, min(32 << 20, cap)), cap))


def _pick_tile(n, target):
    """Largest tile <= target that divides n and is a multiple of 8 (else n)."""
    if n <= target:
        return n
    start = target - (target % 8)
    for t in range(start, 7, -8):
        if n % t == 0:
            return t
    return n


def _const_spec(shape, grid_rank):
    """BlockSpec for a grid-invariant operand (single-buffered if supported)."""
    zeros = (0,) * len(shape)
    index_map = {1: (lambda a: zeros),
                 2: (lambda a, b: zeros),
                 3: (lambda a, b, c: zeros),
                 4: (lambda a, b, c, d: zeros)}[grid_rank]
    try:
        # Grid-invariant weights: single buffer halves resident VMEM footprint.
        return pl.BlockSpec(shape, index_map, pipeline_mode=pl.Buffered(1))
    except (AttributeError, TypeError):
        return pl.BlockSpec(shape, index_map)


# --------------------------- QKV projection kernel -----------------------------

def qkv_proj_kernel(x_ref, g1_ref, b1_ref, wqkv_ref, bqkv_ref, qkv_ref):
    """qkv = LN1(x) @ Wqkv + bqkv  (1/sqrt(D) already folded into Wq, bq)."""
    x = x_ref[0].astype(jnp.float32)                     # (TN, C)
    h1 = _layernorm(x, g1_ref[...], b1_ref[...])
    qkv = jnp.dot(h1.astype(jnp.bfloat16), wqkv_ref[...],
                  preferred_element_type=jnp.float32) + bqkv_ref[...]   # (TN, 3C)
    qkv_ref[0] = qkv.astype(qkv_ref.dtype)               # bf16 out


def _qkv_projection(x, g1, b1, w_qkv, b_qkv, token_tile):
    B, N, C = x.shape
    tn = _pick_tile(N, token_tile)
    grid = (B, N // tn)

    streamed = tn * C * x.dtype.itemsize + tn * 3 * C * 2          # x tile + out tile
    resident = int(w_qkv.nbytes + b_qkv.nbytes + g1.nbytes + b1.nbytes)
    inkernel = tn * 3 * C * (4 + 2) + tn * C * (4 + 2)              # f32 qkv + bf16 copies
    vmem_limit = _vmem_limit(streamed, resident, inkernel)

    flops = 2 * B * N * C * 3 * C
    bytes_accessed = int(x.nbytes + resident + B * N * 3 * C * 2)

    in_specs = [
        pl.BlockSpec((1, tn, C), lambda b, t: (b, t, 0)),           # x token tile
        _const_spec((1, C), 2), _const_spec((1, C), 2),             # LN1 gamma, beta
        _const_spec((C, 3 * C), 2), _const_spec((1, 3 * C), 2),     # Wqkv, bias
    ]

    return pl.pallas_call(
        qkv_proj_kernel,
        out_shape=jax.ShapeDtypeStruct((B, N, 3 * C), jnp.bfloat16),
        grid_spec=pltpu.PrefetchScalarGridSpec(
            num_scalar_prefetch=0,
            grid=grid,
            in_specs=in_specs,
            out_specs=pl.BlockSpec((1, tn, 3 * C), lambda b, t: (b, t, 0)),
        ),
        compiler_params=pltpu.CompilerParams(
            dimension_semantics=("parallel", "parallel"),
            vmem_limit_bytes=vmem_limit),
        cost_estimate=pl.CostEstimate(flops=flops, transcendentals=B * N,
                                      bytes_accessed=bytes_accessed),
    )(x, g1, b1, w_qkv, b_qkv)


# --------------------------- flash attention kernel ----------------------------

def flash_attention_kernel(x_ref, q_ref, k_ref, v_ref, wproj_ref, bproj_ref,
                           x1_ref, m_sc, l_sc, acc_sc, out_sc):
    """x1 = x + b_proj + sum_h softmax(q_h k_h^T) v_h @ Wproj[h]  (online softmax).

    Grid: (B, Q-tiles, heads, KV-tiles); heads/KV are reduction axes.
    """
    h = pl.program_id(2)
    kv = pl.program_id(3)
    last_h = pl.num_programs(2) - 1
    last_kv = pl.num_programs(3) - 1

    @pl.when(jnp.logical_and(h == 0, kv == 0))
    def _():
        # Residual + projection bias, added once per output tile.
        out_sc[...] = x_ref[0].astype(jnp.float32) + bproj_ref[...]

    @pl.when(kv == 0)
    def _():
        m_sc[...] = jnp.full_like(m_sc, -jnp.inf)
        l_sc[...] = jnp.zeros_like(l_sc)
        acc_sc[...] = jnp.zeros_like(acc_sc)

    q = q_ref[0]                                          # (TQ, D) bf16, pre-scaled
    k = k_ref[0]                                          # (TKV, D) bf16
    v = v_ref[0]                                          # (TKV, D) bf16

    s = jax.lax.dot_general(q, k, (((1,), (1,)), ((), ())),
                            preferred_element_type=jnp.float32)         # (TQ, TKV)
    m_new = jnp.maximum(m_sc[...], jnp.max(s, axis=-1, keepdims=True))
    alpha = jnp.exp(m_sc[...] - m_new)
    p = jnp.exp(s - m_new)
    l_sc[...] = alpha * l_sc[...] + jnp.sum(p, axis=-1, keepdims=True)
    acc_sc[...] = alpha * acc_sc[...] + jnp.dot(
        p.astype(jnp.bfloat16), v, preferred_element_type=jnp.float32)   # (TQ, D)
    m_sc[...] = m_new

    @pl.when(kv == last_kv)
    def _():
        # Normalize this head's context and accumulate its partial projection.
        ctx = acc_sc[...] * pl.reciprocal(l_sc[...], approx=True)        # (TQ, D)
        out_sc[...] += jnp.dot(ctx.astype(jnp.bfloat16), wproj_ref[...],
                               preferred_element_type=jnp.float32)       # (TQ, C)

    @pl.when(jnp.logical_and(h == last_h, kv == last_kv))
    def _():
        x1_ref[0] = out_sc[...].astype(x1_ref.dtype)


def _flash_attention(x, qkv, w_proj, b_proj, num_heads, q_tile, kv_tile):
    B, N, C = x.shape
    H = num_heads
    D = C // H
    tq = _pick_tile(N, q_tile)
    tkv = _pick_tile(N, kv_tile)
    grid = (B, N // tq, H, N // tkv)

    itemsize = x.dtype.itemsize
    streamed = (tq * C * itemsize          # x tile
                + tq * D * 2               # q tile (bf16)
                + 2 * tkv * D * 2          # k, v tiles (bf16)
                + D * C * 2                # w_proj row block (bf16)
                + tq * C * itemsize)       # output tile
    resident = int(b_proj.nbytes)
    scratch = (2 * tq + tq * D + tq * C) * 4
    inkernel = 3 * tq * tkv * 4 + 2 * tq * C * 4 + tq * D * 4
    vmem_limit = _vmem_limit(streamed, resident, scratch + inkernel)

    flops = B * (4 * N * N * C + 2 * N * C * C)
    transcendentals = B * H * N * N
    bytes_accessed = int(2 * x.nbytes + qkv.nbytes * max(1, N // tq)
                         + B * (N // tq) * w_proj.nbytes + b_proj.nbytes)

    in_specs = [
        pl.BlockSpec((1, tq, C), lambda b, qi, h, kv: (b, qi, 0)),           # x (residual)
        pl.BlockSpec((1, tq, D), lambda b, qi, h, kv: (b, qi, h)),           # q head h
        pl.BlockSpec((1, tkv, D), lambda b, qi, h, kv: (b, kv, H + h)),      # k head h
        pl.BlockSpec((1, tkv, D), lambda b, qi, h, kv: (b, kv, 2 * H + h)),  # v head h
        pl.BlockSpec((D, C), lambda b, qi, h, kv: (h, 0)),                   # Wproj rows h
        _const_spec((1, C), 4),                                              # b_proj
    ]

    return pl.pallas_call(
        flash_attention_kernel,
        out_shape=jax.ShapeDtypeStruct((B, N, C), x.dtype),
        grid_spec=pltpu.PrefetchScalarGridSpec(
            num_scalar_prefetch=0,
            grid=grid,
            in_specs=in_specs,
            out_specs=pl.BlockSpec((1, tq, C), lambda b, qi, h, kv: (b, qi, 0)),
            scratch_shapes=[
                pltpu.VMEM((tq, 1), jnp.float32),   # running max m
                pltpu.VMEM((tq, 1), jnp.float32),   # running sum l
                pltpu.VMEM((tq, D), jnp.float32),   # per-head context accumulator
                pltpu.VMEM((tq, C), jnp.float32),   # residual + projection accumulator
            ],
        ),
        compiler_params=pltpu.CompilerParams(
            dimension_semantics=("parallel", "parallel", "arbitrary", "arbitrary"),
            vmem_limit_bytes=vmem_limit),
        cost_estimate=pl.CostEstimate(flops=flops,
                                      transcendentals=transcendentals,
                                      bytes_accessed=bytes_accessed),
    )(x, qkv, qkv, qkv, w_proj, b_proj)


# --------------------------------- MLP kernel ---------------------------------

def mlp_block_kernel(x1_ref, g2_ref, be2_ref,
                     wfc1_ref, bfc1_ref, wfc2_ref, bfc2_ref,
                     o_ref):
    """out = x1 + fc2(GELU(fc1(LN2(x1)))) for one (batch, token-tile) block."""
    x1 = x1_ref[0].astype(jnp.float32)                   # (TN, C)
    h2 = _layernorm(x1, g2_ref[...], be2_ref[...])
    m = jnp.dot(h2.astype(jnp.bfloat16), wfc1_ref[...],
                preferred_element_type=jnp.float32) + bfc1_ref[...]     # (TN, M)
    m = _gelu_exact(m)
    # Dropout(0.1) -> identity in eval mode.
    m = jnp.dot(m.astype(jnp.bfloat16), wfc2_ref[...],
                preferred_element_type=jnp.float32) + bfc2_ref[...]     # (TN, C)
    o_ref[0] = (x1 + m).astype(o_ref.dtype)


def _mlp_block(x1, g2, b2, wfc1, bfc1, wfc2, bfc2, token_tile):
    B, N, C = x1.shape
    M = wfc1.shape[1]
    tn = _pick_tile(N, token_tile)
    grid = (B, N // tn)

    itemsize = x1.dtype.itemsize
    streamed = 2 * tn * C * itemsize
    resident = int(g2.nbytes + b2.nbytes + wfc1.nbytes + bfc1.nbytes
                   + wfc2.nbytes + bfc2.nbytes)
    inkernel = tn * M * (4 + 2) + tn * C * (4 + 2)
    vmem_limit = _vmem_limit(streamed, resident, inkernel)
    # TODO(synk): for production C/M where bf16 wfc1+wfc2 no longer fits
    # comfortably in v7x's 64 MiB VMEM, add a K-tiled reduction grid axis with
    # a VMEM f32 accumulator instead of whole-weight residency.

    flops = B * N * (2 * C * M + 2 * M * C)
    transcendentals = B * N * M                           # erf in GELU
    bytes_accessed = int(2 * x1.nbytes + resident)

    in_specs = [
        pl.BlockSpec((1, tn, C), lambda b, t: (b, t, 0)),             # x1 token tile
        _const_spec((1, C), 2), _const_spec((1, C), 2),               # LN2 gamma, beta
        _const_spec((C, M), 2), _const_spec((1, M), 2),               # Wfc1, bias
        _const_spec((M, C), 2), _const_spec((1, C), 2),               # Wfc2, bias
    ]

    return pl.pallas_call(
        mlp_block_kernel,
        out_shape=jax.ShapeDtypeStruct((B, N, C), x1.dtype),
        grid_spec=pltpu.PrefetchScalarGridSpec(
            num_scalar_prefetch=0,
            grid=grid,
            in_specs=in_specs,
            out_specs=pl.BlockSpec((1, tn, C), lambda b, t: (b, t, 0)),
        ),
        compiler_params=pltpu.CompilerParams(
            dimension_semantics=("parallel", "parallel"),
            vmem_limit_bytes=vmem_limit),
        cost_estimate=pl.CostEstimate(flops=flops,
                                      transcendentals=transcendentals,
                                      bytes_accessed=bytes_accessed),
    )(x1, g2, b2, wfc1, bfc1, wfc2, bfc2)


# --------------------------------- wrappers -----------------------------------

def prepare_params(params, num_heads):
    """One-time parameter prep (do NOT call per forward pass):
       * fold 1/sqrt(head_dim) into Wq / bq,
       * pre-cast weight matrices to bf16 (consumed as bf16 MXU operands)."""
    C = params["w_qkv"].shape[0]
    D = C // num_heads
    scale = 1.0 / math.sqrt(D)
    col_scale = jnp.concatenate(
        [jnp.full((C,), scale, jnp.float32), jnp.ones((2 * C,), jnp.float32)])
    bf16 = jnp.bfloat16
    return {
        "g1": params["g1"], "b1": params["b1"],
        "w_qkv": (params["w_qkv"] * col_scale[None, :]).astype(bf16),
        "b_qkv": params["b_qkv"] * col_scale[None, :],
        "w_proj": params["w_proj"].astype(bf16),
        "b_proj": params["b_proj"],
        "g2": params["g2"], "b2": params["b2"],
        "w_fc1": params["w_fc1"].astype(bf16), "b_fc1": params["b_fc1"],
        "w_fc2": params["w_fc2"].astype(bf16), "b_fc2": params["b_fc2"],
    }


def transformer_encoder(x, prepared, num_heads, *,
                        q_tile=256, kv_tile=512, token_tile=256):
    """y = TransformerEncoder(x); x: (B, N, C) float32.
    `prepared` must come from prepare_params().  On v5e, prefer
    q_tile=token_tile=128 (128-wide MXU)."""
    B, N, C = x.shape
    assert C % num_heads == 0
    D = C // num_heads
    # TODO(synk): head_dim < 128 requires a (B, H, N, D) qkv layout; the current
    # per-head column-block slicing needs a lane-dense head_dim.
    assert D % 128 == 0, "head_dim must be a multiple of 128 for this kernel"

    qkv = _qkv_projection(x, prepared["g1"], prepared["b1"],
                          prepared["w_qkv"], prepared["b_qkv"], token_tile)
    x1 = _flash_attention(x, qkv, prepared["w_proj"], prepared["b_proj"],
                          num_heads, q_tile, kv_tile)
    # TODO(synk): fuse the attention epilogue with the MLP call so x1 never
    # round-trips HBM in f32 (pair with K-tiled MLP weights on v7x).
    return _mlp_block(x1, prepared["g2"], prepared["b2"],
                      prepared["w_fc1"], prepared["b_fc1"],
                      prepared["w_fc2"], prepared["b_fc2"], token_tile)


# ------------------------------ reference & init ------------------------------

def reference_transformer_encoder(x, params, num_heads):
    """Pure-JAX (f32) mirror of the PyTorch forward, for correctness checking."""
    B, N, C = x.shape
    D = C // num_heads

    def ln(v, g, b):
        mu = jnp.mean(v, axis=-1, keepdims=True)
        var = jnp.mean((v - mu) ** 2, axis=-1, keepdims=True)
        return (v - mu) / jnp.sqrt(var + EPS) * g + b

    h1 = ln(x, params["g1"], params["b1"])
    qkv = h1 @ params["w_qkv"] + params["b_qkv"]                 # (B, N, 3C)
    qkv = qkv.reshape(B, N, 3, num_heads, D).transpose(2, 0, 3, 1, 4)
    q, k, v = qkv[0], qkv[1], qkv[2]                             # (B, H, N, D)
    scores = jnp.einsum("bhnd,bhmd->bhnm", q, k) / (D ** 0.5)
    attn = jax.nn.softmax(scores, axis=-1)
    o = jnp.einsum("bhnm,bhmd->bhnd", attn, v)                   # (B, H, N, D)
    o = o.transpose(0, 2, 1, 3).reshape(B, N, C)
    o = o @ params["w_proj"] + params["b_proj"]
    x1 = x + o
    h2 = ln(x1, params["g2"], params["b2"])
    m = h2 @ params["w_fc1"] + params["b_fc1"]
    m = 0.5 * m * (1.0 + jax.lax.erf(m / jnp.sqrt(2.0)))
    m = m @ params["w_fc2"] + params["b_fc2"]
    return x1 + m


def init_params(key, embed_dim, mlp_dim):
    ks = jax.random.split(key, 8)
    s = 0.02
    return {
        "g1": jnp.ones((1, embed_dim), jnp.float32),
        "b1": jnp.zeros((1, embed_dim), jnp.float32),
        "w_qkv": s * jax.random.normal(ks[0], (embed_dim, 3 * embed_dim), jnp.float32),
        "b_qkv": s * jax.random.normal(ks[1], (1, 3 * embed_dim), jnp.float32),
        "w_proj": s * jax.random.normal(ks[2], (embed_dim, embed_dim), jnp.float32),
        "b_proj": s * jax.random.normal(ks[3], (1, embed_dim), jnp.float32),
        "g2": jnp.ones((1, embed_dim), jnp.float32),
        "b2": jnp.zeros((1, embed_dim), jnp.float32),
        "w_fc1": s * jax.random.normal(ks[4], (embed_dim, mlp_dim), jnp.float32),
        "b_fc1": s * jax.random.normal(ks[5], (1, mlp_dim), jnp.float32),
        "w_fc2": s * jax.random.normal(ks[6], (mlp_dim, embed_dim), jnp.float32),
        "b_fc2": s * jax.random.normal(ks[7], (1, embed_dim), jnp.float32),
    }


if __name__ == "__main__":
    # Small but lane-dense demo shapes: C and head_dim are multiples of 128.
    B, N, C = 2, 16, 256
    num_heads = 2           # head_dim = 128
    mlp_dim = 512

    key = jax.random.PRNGKey(0)
    kx, kp = jax.random.split(key)
    x = jax.random.normal(kx, (B, N, C), jnp.float32)
    params = init_params(kp, C, mlp_dim)
    prepared = prepare_params(params, num_heads)    # bf16 cast + scale fold, once

    out = transformer_encoder(x, prepared, num_heads)
    out = jax.block_until_ready(out)

    ref = reference_transformer_encoder(x, params, num_heads)
    assert out.shape == (B, N, C)
    max_err = jnp.max(jnp.abs(out - ref))
    # bf16 matmul operands (f32 accumulation) + approx reciprocal in softmax
    # denominator -> relaxed tolerance vs f32 reference.
    assert jnp.allclose(out, ref, rtol=2e-2, atol=2e-2), f"max abs err {max_err}"

    print("KERNEL_OK")
</pallas_src>

<mosaic_0001>
module attributes {stable_mosaic.version = 11 : i64} {
  func.func @qkv_proj_kernel(%arg0: i32, %arg1: i32, %arg2: memref<1x16x256xf32, #tpu.memory_space<vmem>>, %arg3: memref<1x256xf32, #tpu.memory_space<vmem>>, %arg4: memref<1x256xf32, #tpu.memory_space<vmem>>, %arg5: memref<256x768xbf16, #tpu.memory_space<vmem>>, %arg6: memref<1x768xf32, #tpu.memory_space<vmem>>, %arg7: memref<1x16x768xbf16, #tpu.memory_space<vmem>>) attributes {dimension_semantics = [#tpu.dimension_semantics<parallel>, #tpu.dimension_semantics<parallel>], iteration_bounds = array<i64: 2, 1>, scalar_prefetch = 0 : i64, scratch_operands = 0 : i64, tpu.core_type = #tpu.core_type<tc>, window_params = [{transform_indices = @transform_0, window_bounds = array<i64: 1, 16, 256>}, {pipeline_mode = #tpu.pipeline_mode<synchronous>, transform_indices = @transform_1, window_bounds = array<i64: 1, 256>}, {pipeline_mode = #tpu.pipeline_mode<synchronous>, transform_indices = @transform_2, window_bounds = array<i64: 1, 256>}, {pipeline_mode = #tpu.pipeline_mode<synchronous>, transform_indices = @transform_3, window_bounds = array<i64: 256, 768>}, {pipeline_mode = #tpu.pipeline_mode<synchronous>, transform_indices = @transform_4, window_bounds = array<i64: 1, 768>}, {transform_indices = @transform_5, window_bounds = array<i64: 1, 16, 768>}]} {
    %c0 = arith.constant 0 : index
    %c0_0 = arith.constant 0 : index
    %c0_1 = arith.constant 0 : index
    %0 = vector.load %arg2[%c0, %c0_0, %c0_1] : memref<1x16x256xf32, #tpu.memory_space<vmem>>, vector<1x16x256xf32>
    %1 = vector.shape_cast %0 : vector<1x16x256xf32> to vector<16x256xf32>
    %c0_2 = arith.constant 0 : index
    %c0_3 = arith.constant 0 : index
    %2 = vector.load %arg3[%c0_2, %c0_3] : memref<1x256xf32, #tpu.memory_space<vmem>>, vector<1x256xf32>
    %c0_4 = arith.constant 0 : index
    %c0_5 = arith.constant 0 : index
    %3 = vector.load %arg4[%c0_4, %c0_5] : memref<1x256xf32, #tpu.memory_space<vmem>>, vector<1x256xf32>
    %cst = arith.constant dense<0.000000e+00> : vector<16xf32>
    %4 = vector.multi_reduction <add>, %1, %cst [1] : vector<16x256xf32> to vector<16xf32>
    %5 = vector.shape_cast %4 : vector<16xf32> to vector<16x1xf32>
    %cst_6 = arith.constant 2.560000e+02 : f32
    %6 = vector.broadcast %cst_6 : f32 to vector<16x1xf32>
    %7 = arith.divf %5, %6 : vector<16x1xf32>
    %8 = vector.broadcast %7 : vector<16x1xf32> to vector<16x256xf32>
    %9 = arith.subf %1, %8 : vector<16x256xf32>
    %10 = arith.mulf %9, %9 : vector<16x256xf32>
    %cst_7 = arith.constant dense<0.000000e+00> : vector<16xf32>
    %11 = vector.multi_reduction <add>, %10, %cst_7 [1] : vector<16x256xf32> to vector<16xf32>
    %12 = vector.shape_cast %11 : vector<16xf32> to vector<16x1xf32>
    %cst_8 = arith.constant 2.560000e+02 : f32
    %13 = vector.broadcast %cst_8 : f32 to vector<16x1xf32>
    %14 = arith.divf %12, %13 : vector<16x1xf32>
    %15 = vector.broadcast %7 : vector<16x1xf32> to vector<16x256xf32>
    %16 = arith.subf %1, %15 : vector<16x256xf32>
    %cst_9 = arith.constant 9.99999974E-6 : f32
    %17 = vector.broadcast %cst_9 : f32 to vector<16x1xf32>
    %18 = arith.addf %14, %17 : vector<16x1xf32>
    %19 = math.rsqrt %18 : vector<16x1xf32>
    %20 = vector.broadcast %19 : vector<16x1xf32> to vector<16x256xf32>
    %21 = arith.mulf %16, %20 : vector<16x256xf32>
    %22 = vector.broadcast %2 : vector<1x256xf32> to vector<16x256xf32>
    %23 = arith.mulf %21, %22 : vector<16x256xf32>
    %24 = vector.broadcast %3 : vector<1x256xf32> to vector<16x256xf32>
    %25 = arith.addf %23, %24 : vector<16x256xf32>
    %26 = arith.truncf %25 : vector<16x256xf32> to vector<16x256xbf16>
    %c0_10 = arith.constant 0 : index
    %c0_11 = arith.constant 0 : index
    %27 = vector.load %arg5[%c0_10, %c0_11] : memref<256x768xbf16, #tpu.memory_space<vmem>>, vector<256x768xbf16>
    %cst_12 = arith.constant dense<0.000000e+00> : vector<16x768xf32>
    %28 = tpu.matmul %26, %27, %cst_12 {dimension_numbers = #tpu.dot_dimension_numbers<[1], [0], [0], [1], [0, 0, 1, 1], [], []>} : vector<16x256xbf16>, vector<256x768xbf16>, vector<16x768xf32> -> vector<16x768xf32>
    %c0_13 = arith.constant 0 : index
    %c0_14 = arith.constant 0 : index
    %29 = vector.load %arg6[%c0_13, %c0_14] : memref<1x768xf32, #tpu.memory_space<vmem>>, vector<1x768xf32>
    %30 = vector.broadcast %29 : vector<1x768xf32> to vector<16x768xf32>
    %31 = arith.addf %28, %30 : vector<16x768xf32>
    %32 = arith.truncf %31 : vector<16x768xf32> to vector<16x768xbf16>
    %c0_15 = arith.constant 0 : index
    %c0_16 = arith.constant 0 : index
    %c0_17 = arith.constant 0 : index
    %33 = vector.load %arg7[%c0_15, %c0_16, %c0_17] : memref<1x16x768xbf16, #tpu.memory_space<vmem>>, vector<1x16x768xbf16>
    %34 = vector.shape_cast %33 : vector<1x16x768xbf16> to vector<16x768xbf16>
    %35 = vector.shape_cast %32 : vector<16x768xbf16> to vector<1x16x768xbf16>
    tpu.vector_store %arg7[%c0_15, %c0_16, %c0_17], %35 {strides = array<i32>} : memref<1x16x768xbf16, #tpu.memory_space<vmem>>, vector<1x16x768xbf16>,
    return
  }
  func.func @transform_0(%arg0: i32, %arg1: i32) -> (i32, i32, i32) {
    %c0_i32 = arith.constant 0 : i32
    %c0_i32_0 = arith.constant 0 : i32
    return %arg0, %arg1, %c0_i32 : i32, i32, i32
  }
  func.func @transform_1(%arg0: i32, %arg1: i32) -> (i32, i32) {
    %c0_i32 = arith.constant 0 : i32
    %c0_i32_0 = arith.constant 0 : i32
    %c0_i32_1 = arith.constant 0 : i32
    return %c0_i32, %c0_i32_0 : i32, i32
  }
  func.func @transform_2(%arg0: i32, %arg1: i32) -> (i32, i32) {
    %c0_i32 = arith.constant 0 : i32
    %c0_i32_0 = arith.constant 0 : i32
    %c0_i32_1 = arith.constant 0 : i32
    return %c0_i32, %c0_i32_0 : i32, i32
  }
  func.func @transform_3(%arg0: i32, %arg1: i32) -> (i32, i32) {
    %c0_i32 = arith.constant 0 : i32
    %c0_i32_0 = arith.constant 0 : i32
    %c0_i32_1 = arith.constant 0 : i32
    return %c0_i32, %c0_i32_0 : i32, i32
  }
  func.func @transform_4(%arg0: i32, %arg1: i32) -> (i32, i32) {
    %c0_i32 = arith.constant 0 : i32
    %c0_i32_0 = arith.constant 0 : i32
    %c0_i32_1 = arith.constant 0 : i32
    return %c0_i32, %c0_i32_0 : i32, i32
  }
  func.func @transform_5(%arg0: i32, %arg1: i32) -> (i32, i32, i32) {
    %c0_i32 = arith.constant 0 : i32
    %c0_i32_0 = arith.constant 0 : i32
    return %arg0, %arg1, %c0_i32 : i32, i32, i32
  }
}

</mosaic_0001>

<bundles_post_ra>
// kernel: tpu_custom_call.1
= control target key start
LH: loop header
LB: loop body
LE: loop exit
PB: predicated region body
PF: predicated region fallthrough
CT: control target
= control target key end

     0   :  { %10 = vsyncpa [#allocation3], 0  ;;  %s2068_s0 = inlined_call_operand.hbm [shape: f32[2,16,256], index: 0, kind: input, shape index: {}]   ;;  %s2069_s1 = inlined_call_operand.vmem [shape: f32[1,256], index: 1, kind: input, shape index: {}]   ;;  %s2070_s2 = inlined_call_operand.vmem [shape: f32[1,256], index: 2, kind: input, shape index: {}]   ;;  %s2071_s3 = inlined_call_operand.hbm [shape: bf16[256,768], index: 3, kind: input, shape index: {}]   ;;  %s2072_s4 = inlined_call_operand.vmem [shape: f32[1,768], index: 4, kind: input, shape index: {}]   ;;  %s2073_s5 = inlined_call_operand.hbm [shape: bf16[2,16,768], index: 5, kind: output, shape index: {}]  }
   0x1   :  { %12 = vsyncpa [#allocation3 + $0x1], 0 }
   0x2   :  { %13 = vsyncpa [#allocation6], 0 }
   0x3   :  { %14 = vsyncpa [#allocation4], 0 }
   0x4   :  { %16 = vsyncpa [#allocation4 + $0x1], 0  ;;  %s1780_s18 = smov 0   ;;  %s1782_s19 = smov 0  }
   0x5   :  { %s1784_s20 = smov 0   ;;  %s1786_s21 = smov 0  }
   0x6   :  { %s1788_s22 = smov 0   ;;  %s1790_s23 = smov 0  }
   0x7 LB: > { %s1243_s24 = sadd.s32 4294967295, %s1739_s23   ;;  %s1244_s25 = sadd.s32 4294967294, %s1739_s23   ;;  %s1739_s23 = sphi %s1790_s23, %s22_s23   ;;  %s1735_s22 = sphi %s1788_s22, %s2097_s22   ;;  %s1731_s21 = sphi %s1786_s21, %s2096_s21   ;;  %s1727_s20 = sphi %s1784_s20, %s2095_s20   ;;  %s1723_s19 = sphi %s1782_s19, %s2094_s19   ;;  %s1719_s18 = sphi %s1780_s18, %s2093_s18  }
   0x8   : > { %p56_p0 = scmp.ne.s32.totalorder %s1723_s19, %s1719_s18  ;;  %p1814_p1 = scmp.eq.s32.totalorder %s1243_s24, 0 }
   0x9   : > { %p1818_p2 = scmp.eq.s32.totalorder %s1243_s24, 1  ;;  %p172_p3 = scmp.eq.s32.totalorder %s1244_s25, 1 }
   0xa   : > { %s2078_s26 = scalar_select %p1814_p1, 1, 0 }
   0xb   : > { %s2079_s27 = scalar_select %p1818_p2, 1, 0 }
   0xc   : > { %p1824_p4 = por %p1814_p1, %p56_p0  ;;  %p1245_p5 = scmp.ge.s32.totalorder %s1739_s23, 1 }
   0xd   : > { %p1829_p6 = por %p172_p3, %p56_p0  ;;  %p179_p7 = scmp.lt.s32.totalorder %s1739_s23, 3 }
   0xe   : > { %s2080_s28 = scalar_select %p1824_p4, 1, 0 }
   0xf   : > { %s2081_s29 = scalar_select %p1829_p6, 1, 0 }
  0x10   : > { %p1834_p8 = pnand %p1245_p5, %p179_p7  ;;  %s1741_s6 = smov [#allocation5]  }
  0x11   : > { %s197_s7 = sshll.u32 %s1741_s6, 4  ;;  %s34_s9 = sadd.s32 1, %s1735_s22  ;;  %s198_s7 = int_to_ptr.vmem [resolvable:$true] %s197_s7 }
  0x12   : > { %s2082_s30 = scalar_select %p1834_p8, 1, 0 }
  0x13   : > { %p1376_p9 = pneg %p1834_p8  ;;  %s1595_s12 = scalar_lea.hbm %s2071_s3, 12288 }
  0x14   : > { %p1596_p12 = scmp.ne.s32.totalorder %s2071_s3, %s1595_s12  ;;  %p1602_p5 = scmp.lt.u32.totalorder %s1595_s12, %s2071_s3 }
  0x15   : > { %p1843_p11 = pnand %p1376_p9, %p1814_p1 }
  0x17   : > { %p1597_p13 = pneg %p1843_p11 }
  0x19   : > { %p1598_p0 = pnand %p1597_p13, %p1596_p12 }
  0x1b   : > { %p1599_p3 = pneg %p1598_p0 }
  0x1d   : > { %p1604_p7 = pnand %p1602_p5, %p1599_p3 }
  0x1f   : > { %1607 = shalt.err (!%p1604_p7)
}
  0x20   : > { %s1608_s17 = scalar_lea.vmem %s198_s7, 12288  ;;  %p1616_p1 = scmp.lt.s32.totalorder %s198_s7, %s198_s7 }
  0x21   : > { %p1609_p9 = scmp.ne.s32.totalorder %s198_s7, %s1608_s17  ;;  %p1617_p4 = scmp.lt.s32.totalorder %s1608_s17, %s1608_s17 }
  0x23   : > { %p1611_p10 = pnand %p1609_p9, %p1597_p13  ;;  %p1618_p8 = por %p1617_p4, %p1616_p1 }
  0x25   : > { %p1612_p6 = pneg %p1611_p10 }
  0x27   : > { %p1619_p2 = pnand %p1618_p8, %p1612_p6 }
  0x29   : > { %1622 = shalt.err (!%p1619_p2)
}
  0x2a   : > { %s1742_s24 = smov 384   ;;  %s1743_s25 = smov 24  }
  0x2b   : > { %1379 = dma.hbm_to_vmem [thread:$0]  (!%p1843_p11), %s2071_s3, 12288, %s198_s7, [#allocation6], %s1742_s24, %s1742_s24, %s1743_s25  }
  0x2c   : > { %p36_p1 = scmp.ge.s32.totalorder %s34_s9, 2  ;;  %s43_s11 = sadd.s32 1, %s1727_s20 }
  0x2d   : > { %p50_p2 = scmp.ne.s32.totalorder %s1727_s20, %s1723_s19  ;;  %p51_p4 = scmp.eq.s32.totalorder %s1739_s23, 0 }
  0x2e   : > { %s2099_s9 = smov (%p36_p1, %s34_s9), 0  ;;  %p2085_p8 = scmp.ne.s32.totalorder %s2079_s27, 0 }
  0x2f   : > { %p1870_p6 = por %p51_p4, %p50_p2  ;;  %s38_s8 = ssub.s32 %s1735_s22, %s2099_s9 }
  0x30   : > { %p1876_p10 = por %p2085_p8, %p50_p2  ;;  %p1389_p12 = scmp.lt.s32.totalorder %s1739_s23, 2 }
  0x31   : > { %p41_p11 = scmp.eq.s32.totalorder %s38_s8, 0  ;;  %s214_s7 = sand.u32 1, %s1727_s20  }
  0x32   : > { %s1248_s14 = sshll.u32 %s214_s7, 5  ;;  %s1359_s16 = sshll.u32 %s1735_s22, 9 }
  0x33   : > { %s1885_s15 = scalar_select %p41_p11, %s1727_s20, %s43_s11  }
  0x34   : > { %s1891_s25 = scalar_lea.hbm %s2068_s0, %s1359_s16  ;;  %s218_s27 = scalar_lea.vmem [#allocation2], %s1248_s14 }
  0x35   : > { %s228_s6 = sshll.u32 %s218_s27, 4  ;;  %p1897_p13 = pnand %p1389_p12, %p1870_p6  ;;  %s1893_s6 = int_to_ptr.vmem [resolvable:$true] %s228_s6 }
  0x36   : > { %s1901_s11 = scalar_lea.sflag [#allocation3], %s214_s7  ;;  %s1623_s8 = scalar_lea.hbm %s1891_s25, 512 }
  0x37   : > { %p1624_p0 = scmp.ne.s32.totalorder %s1891_s25, %s1623_s8  ;;  %p1625_p3 = pneg %p1897_p13 }
  0x38   : > { %s1628_s12 = scalar_lea.hbm %s2068_s0, 1024  ;;  %p1629_p9 = scmp.lt.u32.totalorder %s1891_s25, %s2068_s0 }
  0x39   : > { %p1626_p5 = pnand %p1625_p3, %p1624_p0  ;;  %p1630_p1 = scmp.lt.u32.totalorder %s1628_s12, %s1623_s8 }
  0x3a   : > { %p1632_p4 = scmp.lt.u32.totalorder %s1623_s8, %s1891_s25 }
  0x3b   : > { %p1627_p7 = pneg %p1626_p5  ;;  %p1631_p2 = por %p1630_p1, %p1629_p9 }
  0x3d   : > { %p1633_p6 = por %p1632_p4, %p1631_p2 }
  0x3f   : > { %p1634_p8 = pnand %p1633_p6, %p1627_p7 }
  0x41   : > { %1637 = shalt.err (!%p1634_p8)
}
  0x42   : > { %s1638_s7 = scalar_lea.vmem %s1893_s6, 512  ;;  %s1744_s27 = smov [#allocation2]  }
  0x43   : > { %p1639_p12 = scmp.ne.s32.totalorder %s1893_s6, %s1638_s7  ;;  %s1643_s14 = sshll.u32 %s1744_s27, 4  ;;  %s1644_s14 = int_to_ptr.vmem [resolvable:$false] %s1643_s14 }
  0x44   : > { %s1645_s16 = scalar_lea.vmem %s1644_s14, 1024  ;;  %p1646_p5 = scmp.lt.s32.totalorder %s1893_s6, %s1644_s14 }
  0x45   : > { %p1641_p11 = pnand %p1639_p12, %p1625_p3  ;;  %p1647_p9 = scmp.lt.s32.totalorder %s1645_s16, %s1638_s7 }
  0x47   : > { %p1642_p0 = pneg %p1641_p11  ;;  %p1648_p1 = por %p1647_p9, %p1646_p5 }
  0x49   : > { %p1649_p2 = pnand %p1648_p1, %p1642_p0 }
  0x4b   : > { %1652 = shalt.err (!%p1649_p2)
}
  0x4c   : > { %s1745_s8 = smov 256   ;;  %s1746_s12 = smov 16  }
  0x4d   : > { %1383 = dma.hbm_to_vmem [thread:$0]  (!%p1897_p13), %s1891_s25, 512, %s1893_s6, %s1901_s11, %s1745_s8, %s1745_s8, %s1746_s12  }
  0x4e   : > { %p2088_p3 = scmp.ne.s32.totalorder %s2082_s30, 0 }
  0x4f   : > { %s1932_s17 = sand.u32 (!%p2088_p3), 1, %s1723_s19   ;;  %p2089_p7 = scmp.ne.s32.totalorder (!%p2088_p3), %s2080_s28, 0 }
  0x50   : > { %240 = sbr.rel (%p2088_p3) target bundleno = 712 (0x2c8), region = 40  ;;  %s1252_s24 = sshll.u32 (!%p2088_p3), %s1932_s17, 5 }
  0x51   : > { %s243_s7 = scalar_lea.sflag (!%p2088_p3), [#allocation3], %s1932_s17  ;;  %s246_s27 = scalar_lea.vmem (!%p2088_p3), [#allocation2], %s1252_s24 }
  0x57   : > { %1706 = dma.done.wait (%p2089_p7), %s243_s7, 512  }
  0x58   : > { %1708 = vsyncadd (%p2089_p7), %s243_s7, 4294966784  ;;  %p2090_p4 = scmp.ne.s32.totalorder %s2078_s26, 0 }
  0x5a   : > { %1710 = dma.done.wait (%p2090_p4), [#allocation6], 12288  }
  0x5b   : > { %1712 = vsyncadd (%p2090_p4), [#allocation6], 4294955008  ;;  %v1944_v0 = vld [vmem:[%s246_s27] sm:$0xff]  ;;  %v1946_v1 = vld [vmem:[%s246_s27 + $0x8] sm:$0xff]  ;;  %s1366_s11 = smul.u32 48, %s1932_s17  ;;  %s1747_s26 = smov [#allocation7]  }
  0x5c   : > { %v1948_v2 = vld [vmem:[%s246_s27 + $0x10] sm:$0xff]  ;;  %v285_v3 = vadd.f32 %v1946_v1, %v1944_v0  ;;  %v1952_v4 = vld [vmem:[%s246_s27 + $0x18] sm:$0xff]  ;;  %v1450_v8 = vld [vmem:[#allocation5 + $0xc] ss:$24 sps:$4 sm:$0xff]   ;;  %s1367_s8 = smul.u32 768, %s1731_s21  ;;  %s1130_s21 = scalar_lea.sflag [#allocation4], %s1932_s17 }
  0x5d   : > { %v288_v5 = vadd.f32 %v1952_v4, %v1948_v2  ;;  %v1447_v6 = vld [vmem:[#allocation5 + $0x4] ss:$24 sps:$4 sm:$0xff]   ;;  %v1449_v7 = vld [vmem:[#allocation5] ss:$24 sps:$4 sm:$0xff]   ;;  %v1453_v10 = vld [vmem:[#allocation5 + $0x34] ss:$24 sps:$4 sm:$0xff]   ;;  %1001 = vmatprep.subr.bf16.mxu1 %v1450_v8 }
  0x5e   : > { %286 = vadd.xlane.f32.xlu0 %v285_v3  ;;  %v1452_v9 = vld [vmem:[#allocation5 + $0x8] ss:$24 sps:$4 sm:$0xff]   ;;  %958 = vmatprep.subr.bf16.mxu0 %v1447_v6  ;;  %v1456_v11 = vld [vmem:[#allocation5 + $0x3c] ss:$24 sps:$4 sm:$0xff]   ;;  %v1458_v13 = vld [vmem:[#allocation5 + $0x38] ss:$24 sps:$4 sm:$0xff]   ;;  %s2019_s7 = scalar_lea.hbm %s2073_s5, %s1367_s8 }
  0x5f   : > { %959 = vmatpush1.bf16.msra.mxu0 %v1449_v7  ;;  %1002 = vmatpush1.bf16.msra.mxu1 %v1452_v9  ;;  %v1455_v12 = vld [vmem:[#allocation5 + $0x30] ss:$24 sps:$4 sm:$0xff]   ;;  %v1459_v14 = vld [vmem:[#allocation5 + $0x64] ss:$24 sps:$4 sm:$0xff]   ;;  %v1461_v16 = vld [vmem:[#allocation5 + $0x60] ss:$24 sps:$4 sm:$0xff]  }
  0x60   : > { %960 = vmatprep.subr.bf16.mxu0 %v1453_v10  ;;  %1003 = vmatprep.subr.bf16.mxu1 %v1456_v11  ;;  %v1462_v15 = vld [vmem:[#allocation5 + $0x6c] ss:$24 sps:$4 sm:$0xff]   ;;  %v1464_v17 = vld [vmem:[#allocation5 + $0x68] ss:$24 sps:$4 sm:$0xff]   ;;  %v1468_v19 = vld [vmem:[#allocation5 + $0x9c] ss:$24 sps:$4 sm:$0xff]  }
  0x61   : > { %v1465_v18 = vld [vmem:[#allocation5 + $0x94] ss:$24 sps:$4 sm:$0xff]   ;;  %v1467_v20 = vld [vmem:[#allocation5 + $0x90] ss:$24 sps:$4 sm:$0xff]   ;;  %v1471_v22 = vld [vmem:[#allocation5 + $0xc4] ss:$24 sps:$4 sm:$0xff]  }
  0x62   : > { %289 = vadd.xlane.f32.xlu0 %v288_v5  ;;  %v1470_v21 = vld [vmem:[#allocation5 + $0x98] ss:$24 sps:$4 sm:$0xff]   ;;  %v1474_v23 = vld [vmem:[#allocation5 + $0xcc] ss:$24 sps:$4 sm:$0xff]   ;;  %v1476_v25 = vld [vmem:[#allocation5 + $0xc8] ss:$24 sps:$4 sm:$0xff]  }
  0x63   : > { %961 = vmatpush1.bf16.msra.mxu0 %v1455_v12  ;;  %1004 = vmatpush1.bf16.msra.mxu1 %v1458_v13  ;;  %v1473_v24 = vld [vmem:[#allocation5 + $0xc0] ss:$24 sps:$4 sm:$0xff]   ;;  %v1477_v26 = vld [vmem:[#allocation5 + $0xf4] ss:$24 sps:$4 sm:$0xff]   ;;  %v1479_v28 = vld [vmem:[#allocation5 + $0xf0] ss:$24 sps:$4 sm:$0xff]  }
  0x64   : > { %962 = vmatprep.subr.bf16.mxu0 %v1459_v14  ;;  %1005 = vmatprep.subr.bf16.mxu1 %v1462_v15  ;;  %v1480_v27 = vld [vmem:[#allocation5 + $0xfc] ss:$24 sps:$4 sm:$0xff]   ;;  %v1482_v29 = vld [vmem:[#allocation5 + $0xf8] ss:$24 sps:$4 sm:$0xff]   ;;  %v1486_v31 = vld [vmem:[#allocation5 + $0x12c] ss:$24 sps:$4 sm:$0xff]  }
  0x65   : > { %v1483_v30 = vld [vmem:[#allocation5 + $0x124] ss:$24 sps:$4 sm:$0xff]   ;;  %v1485_v32 = vld [vmem:[#allocation5 + $0x120] ss:$24 sps:$4 sm:$0xff]   ;;  %v1489_v34 = vld [vmem:[#allocation5 + $0x154] ss:$24 sps:$4 sm:$0xff]  }
  0x66   : > { %v1488_v33 = vld [vmem:[#allocation5 + $0x128] ss:$24 sps:$4 sm:$0xff]   ;;  %v1492_v35 = vld [vmem:[#allocation5 + $0x15c] ss:$24 sps:$4 sm:$0xff]   ;;  %v1494_v37 = vld [vmem:[#allocation5 + $0x158] ss:$24 sps:$4 sm:$0xff]  }
  0x67   : > { %963 = vmatpush1.bf16.msra.mxu0 %v1461_v16  ;;  %1006 = vmatpush1.bf16.msra.mxu1 %v1464_v17  ;;  %v1491_v36 = vld [vmem:[#allocation5 + $0x150] ss:$24 sps:$4 sm:$0xff]   ;;  %v1495_v38 = vld [vmem:[#allocation5 + $0x184] ss:$24 sps:$4 sm:$0xff]   ;;  %v1497_v40 = vld [vmem:[#allocation5 + $0x180] ss:$24 sps:$4 sm:$0xff]  }
  0x68   : > { %964 = vmatprep.subr.bf16.mxu0 %v1465_v18  ;;  %1007 = vmatprep.subr.bf16.mxu1 %v1468_v19  ;;  %v1498_v39 = vld [vmem:[#allocation5 + $0x18c] ss:$24 sps:$4 sm:$0xff]   ;;  %v1500_v41 = vld [vmem:[#allocation5 + $0x188] ss:$24 sps:$4 sm:$0xff]   ;;  %v1504_v58 = vld [vmem:[#allocation5 + $0x1bc] ss:$24 sps:$4 sm:$0xff]  }
  0x69   : > { %v1501_v42 = vld [vmem:[#allocation5 + $0x1b4] ss:$24 sps:$4 sm:$0xff]   ;;  %v1503_v57 = vld [vmem:[#allocation5 + $0x1b0] ss:$24 sps:$4 sm:$0xff]   ;;  %v1507_v60 = vld [vmem:[#allocation5 + $0x1e4] ss:$24 sps:$4 sm:$0xff]  }
  0x6a   : > { %v1506_v59 = vld [vmem:[#allocation5 + $0x1b8] ss:$24 sps:$4 sm:$0xff]   ;;  %v1510_v62 = vld [vmem:[#allocation5 + $0x1ec] ss:$24 sps:$4 sm:$0xff]   ;;  %v1512_v63 = vld [vmem:[#allocation5 + $0x1e8] ss:$24 sps:$4 sm:$0xff]  }
  0x6b   : > { %965 = vmatpush1.bf16.msra.mxu0 %v1467_v20  ;;  %1008 = vmatpush1.bf16.msra.mxu1 %v1470_v21  ;;  %v1509_v61 = vld [vmem:[#allocation5 + $0x1e0] ss:$24 sps:$4 sm:$0xff]   ;;  %v1522_v6 = vld [vmem:[#allocation5 + $0x24c] ss:$24 sps:$4 sm:$0xff]   ;;  %v1528_v9 = vld [vmem:[#allocation5 + $0x27c] ss:$24 sps:$4 sm:$0xff]  }
  0x6c   : > { %966 = vmatprep.subr.bf16.mxu0 %v1471_v22  ;;  %1009 = vmatprep.subr.bf16.mxu1 %v1474_v23  ;;  %v1518_v3 = vld [vmem:[#allocation5 + $0x218] ss:$24 sps:$4 sm:$0xff]   ;;  %v1524_v7 = vld [vmem:[#allocation5 + $0x248] ss:$24 sps:$4 sm:$0xff]   ;;  %v1525_v8 = vld [vmem:[#allocation5 + $0x274] ss:$24 sps:$4 sm:$0xff]  }
  0x6d   : > { %v1521_v5 = vld [vmem:[#allocation5 + $0x240] ss:$24 sps:$4 sm:$0xff]   ;;  %v1527_v10 = vld [vmem:[#allocation5 + $0x270] ss:$24 sps:$4 sm:$0xff]   ;;  %v1531_v12 = vld [vmem:[#allocation5 + $0x2a4] ss:$24 sps:$4 sm:$0xff]  }
  0x6e   : > { %v1530_v11 = vld [vmem:[#allocation5 + $0x278] ss:$24 sps:$4 sm:$0xff]   ;;  %v1534_v13 = vld [vmem:[#allocation5 + $0x2ac] ss:$24 sps:$4 sm:$0xff]   ;;  %v1536_v15 = vld [vmem:[#allocation5 + $0x2a8] ss:$24 sps:$4 sm:$0xff]  }
  0x6f   : > { %967 = vmatpush1.bf16.msra.mxu0 %v1473_v24  ;;  %1010 = vmatpush1.bf16.msra.mxu1 %v1476_v25  ;;  %v1533_v14 = vld [vmem:[#allocation5 + $0x2a0] ss:$24 sps:$4 sm:$0xff]   ;;  %v1537_v16 = vld [vmem:[#allocation5 + $0x2d4] ss:$24 sps:$4 sm:$0xff]   ;;  %v1539_v18 = vld [vmem:[#allocation5 + $0x2d0] ss:$24 sps:$4 sm:$0xff]   ;;  %v319_v25 = vlaneseq }
  0x70   : > { %968 = vmatprep.subr.bf16.mxu0 %v1477_v26  ;;  %1011 = vmatprep.subr.bf16.mxu1 %v1480_v27  ;;  %v1540_v17 = vld [vmem:[#allocation5 + $0x2dc] ss:$24 sps:$4 sm:$0xff]   ;;  %v1542_v19 = vld [vmem:[#allocation5 + $0x2d8] ss:$24 sps:$4 sm:$0xff]   ;;  %s276_s14 = scalar_lea.vmem [#allocation7], %s1366_s11  ;;  %s1657_s28 = sshll.u32 %s1747_s26, 4  ;;  %s1658_s28 = int_to_ptr.vmem [resolvable:$false] %s1657_s28 }
  0x71   : > { %v1545_v20 = vld [vmem:[#allocation5 + $0x14] ss:$24 sps:$4 sm:$0xff]   ;;  %s1146_s16 = sshll.u32 %s276_s14, 4  ;;  %s1659_s30 = scalar_lea.vmem %s1658_s28, 1536  ;;  %s2014_s16 = int_to_ptr.vmem [resolvable:$true] %s1146_s16 }
  0x72   : > { %s1653_s27 = scalar_lea.vmem %s2014_s16, 768  ;;  %p1660_p12 = scmp.lt.s32.totalorder %s2014_s16, %s1658_s28 }
  0x73   : > { %969 = vmatpush1.bf16.msra.mxu0 %v1479_v28  ;;  %1012 = vmatpush1.bf16.msra.mxu1 %v1482_v29  ;;  %v1976_v28 = vshrl.u32 %v319_v25, 7  ;;  %p1654_p13 = scmp.ne.s32.totalorder %s2014_s16, %s1653_s27  ;;  %p1661_p11 = scmp.lt.s32.totalorder %s1659_s30, %s1653_s27 }
  0x74   : > { %970 = vmatprep.subr.bf16.mxu0 %v1483_v30  ;;  %1013 = vmatprep.subr.bf16.mxu1 %v1486_v31  ;;  %v283_v31 = vld [vmem:[%s2069_s1] sm:$0x3] }
  0x75   : > { %v1979_v29 = vsub.s32 1, %v1976_v28  ;;  %v1982_v30 = vsub.s32 0, %v1976_v28  ;;  %p1655_p6 = pnand %p1654_p13, %p1876_p10  ;;  %p1662_p0 = por %p1661_p11, %p1660_p12 }
  0x77   : > { %971 = vmatpush1.bf16.msra.mxu0 %v1485_v32  ;;  %1014 = vmatpush1.bf16.msra.mxu1 %v1488_v33  ;;  %v284_v33 = vld [vmem:[%s2070_s2] sm:$0x3]  ;;  %p1656_p8 = pneg %p1655_p6 }
  0x78   : > { %972 = vmatprep.subr.bf16.mxu0 %v1489_v34  ;;  %1015 = vmatprep.subr.bf16.mxu1 %v1492_v35  ;;  %v326_v35 = vrot.slane %v283_v31, %v1979_v29 }
  0x79   : > { %p1663_p5 = pnand %p1662_p0, %p1656_p8 }
  0x7b   : > { %973 = vmatpush1.bf16.msra.mxu0 %v1491_v36  ;;  %1016 = vmatpush1.bf16.msra.mxu1 %v1494_v37  ;;  %v322_v37 = vrot.slane %v283_v31, %v1982_v30 }
  0x7c   : > { %974 = vmatprep.subr.bf16.mxu0 %v1495_v38  ;;  %1017 = vmatprep.subr.bf16.mxu1 %v1498_v39  ;;  %v341_v39 = vrot.slane %v284_v33, %v1979_v29 }
  0x7f   : > { %975 = vmatpush1.bf16.msra.mxu0 %v1497_v40  ;;  %1018 = vmatpush1.bf16.msra.mxu1 %v1500_v41  ;;  %v337_v40 = vrot.slane %v284_v33, %v1982_v30 }
  0x80   : > { %976 = vmatprep.subr.bf16.mxu0 %v1501_v42  ;;  %1019 = vmatprep.subr.bf16.mxu1 %v1504_v58  ;;  %v1554_v58 = vld [vmem:[#allocation5 + $0xa4] ss:$24 sps:$4 sm:$0xff]  }
  0x83   : > { %977 = vmatpush1.bf16.msra.mxu0 %v1503_v57  ;;  %1020 = vmatpush1.bf16.msra.mxu1 %v1506_v59  ;;  %v1549_v57 = vld [vmem:[#allocation5 + $0x70] ss:$24 sps:$4 sm:$0xff]   ;;  %v1552_v59 = vld [vmem:[#allocation5 + $0xa0] ss:$24 sps:$4 sm:$0xff]  }
  0x84   : > { %978 = vmatprep.subr.bf16.mxu0 %v1507_v60  ;;  %1021 = vmatprep.subr.bf16.mxu1 %v1510_v62  ;;  %v1557_v60 = vld [vmem:[#allocation5 + $0xd4] ss:$24 sps:$4 sm:$0xff]   ;;  %v1560_v62 = vld [vmem:[#allocation5 + $0x104] ss:$24 sps:$4 sm:$0xff]  }
  0x87   : > { %979 = vmatpush1.bf16.msra.mxu0 %v1509_v61  ;;  %1022 = vmatpush1.bf16.msra.mxu1 %v1512_v63  ;;  %v1555_v61 = vld [vmem:[#allocation5 + $0xd0] ss:$24 sps:$4 sm:$0xff]   ;;  %v1558_v63 = vld [vmem:[#allocation5 + $0x100] ss:$24 sps:$4 sm:$0xff]  }
  0xeb   : > { %v287_v43 = vpop.xlane.xlu0 %286 }
  0xec   : > { %v292_v44 = vmul.f32 0.00390625, %v287_v43 }
  0xee   : > { %v1957_v45 = vsub.f32 %v1944_v0, %v292_v44  ;;  %v1960_v46 = vsub.f32 %v1946_v1, %v292_v44  ;;  %v1513_v0 = vld [vmem:[#allocation5 + $0x214] ss:$24 sps:$4 sm:$0xff]   ;;  %v1515_v1 = vld [vmem:[#allocation5 + $0x210] ss:$24 sps:$4 sm:$0xff]  }
  0xef   : > { %v290_v47 = vpop.xlane.xlu0 %289  ;;  %980 = vmatprep.subr.bf16.mxu0 %v1513_v0  ;;  %v1563_v0 = vld [vmem:[#allocation5 + $0x134] ss:$24 sps:$4 sm:$0xff]  }
  0xf0   : > { %v293_v48 = vmul.f32 0.00390625, %v290_v47  ;;  %v298_v49 = vmul.f32 %v1957_v45, %v1957_v45  ;;  %v299_v50 = vmul.f32 %v1960_v46, %v1960_v46  ;;  %981 = vmatpush1.bf16.msra.mxu0 %v1515_v1  ;;  %v1561_v1 = vld [vmem:[#allocation5 + $0x130] ss:$24 sps:$4 sm:$0xff]  }
  0xf2   : > { %v1967_v51 = vsub.f32 %v1948_v2, %v293_v48  ;;  %v1970_v52 = vsub.f32 %v1952_v4, %v293_v48  ;;  %v302_v53 = vadd.f32 %v299_v50, %v298_v49  ;;  %v1516_v2 = vld [vmem:[#allocation5 + $0x21c] ss:$24 sps:$4 sm:$0xff]  }
  0xf3   : > { %1023 = vmatprep.subr.bf16.mxu1 %v1516_v2  ;;  %v1519_v4 = vld [vmem:[#allocation5 + $0x244] ss:$24 sps:$4 sm:$0xff]  }
  0xf4   : > { %303 = vadd.xlane.f32.xlu1 %v302_v53  ;;  %v300_v54 = vmul.f32 %v1967_v51, %v1967_v51  ;;  %v301_v55 = vmul.f32 %v1970_v52, %v1970_v52  ;;  %1024 = vmatpush1.bf16.msra.mxu1 %v1518_v3  ;;  %v1566_v2 = vld [vmem:[#allocation5 + $0x164] ss:$24 sps:$4 sm:$0xff]   ;;  %v1564_v3 = vld [vmem:[#allocation5 + $0x160] ss:$24 sps:$4 sm:$0xff]  }
  0xf5   : > { %982 = vmatprep.subr.bf16.mxu0 %v1519_v4  ;;  %1025 = vmatprep.subr.bf16.mxu1 %v1522_v6  ;;  %v1569_v4 = vld [vmem:[#allocation5 + $0x194] ss:$24 sps:$4 sm:$0xff]   ;;  %v1572_v6 = vld [vmem:[#allocation5 + $0x1c4] ss:$24 sps:$4 sm:$0xff]  }
  0xf6   : > { %v305_v56 = vadd.f32 %v301_v55, %v300_v54  ;;  %983 = vmatpush1.bf16.msra.mxu0 %v1521_v5  ;;  %v1543_v54 = vld [vmem:[#allocation5 + $0x10] ss:$24 sps:$4 sm:$0xff]  }
  0xf7   : > { %984 = vmatprep.subr.bf16.mxu0 %v1525_v8  ;;  %v1567_v5 = vld [vmem:[#allocation5 + $0x190] ss:$24 sps:$4 sm:$0xff]   ;;  %v1575_v8 = vld [vmem:[#allocation5 + $0x1f4] ss:$24 sps:$4 sm:$0xff]  }
  0xf8   : > { %306 = vadd.xlane.f32.xlu1 %v305_v56  ;;  %1026 = vmatpush1.bf16.msra.mxu1 %v1524_v7  ;;  %v1548_v56 = vld [vmem:[#allocation5 + $0x44] ss:$24 sps:$4 sm:$0xff]   ;;  %v1570_v7 = vld [vmem:[#allocation5 + $0x1c0] ss:$24 sps:$4 sm:$0xff]  }
  0xf9   : > { %1027 = vmatprep.subr.bf16.mxu1 %v1528_v9  ;;  %v1573_v9 = vld [vmem:[#allocation5 + $0x1f0] ss:$24 sps:$4 sm:$0xff]  }
  0xfa   : > { %985 = vmatpush1.bf16.msra.mxu0 %v1527_v10  ;;  %v1578_v10 = vld [vmem:[#allocation5 + $0x224] ss:$24 sps:$4 sm:$0xff]  }
  0xfb   : > { %986 = vmatprep.subr.bf16.mxu0 %v1531_v12  ;;  %v1581_v12 = vld [vmem:[#allocation5 + $0x254] ss:$24 sps:$4 sm:$0xff]  }
  0xfc   : > { %1028 = vmatpush1.bf16.msra.mxu1 %v1530_v11  ;;  %v1576_v11 = vld [vmem:[#allocation5 + $0x220] ss:$24 sps:$4 sm:$0xff]  }
  0xfd   : > { %1029 = vmatprep.subr.bf16.mxu1 %v1534_v13  ;;  %v1579_v13 = vld [vmem:[#allocation5 + $0x250] ss:$24 sps:$4 sm:$0xff]  }
  0xfe   : > { %987 = vmatpush1.bf16.msra.mxu0 %v1533_v14  ;;  %v1584_v14 = vld [vmem:[#allocation5 + $0x284] ss:$24 sps:$4 sm:$0xff]  }
  0xff   : > { %988 = vmatprep.subr.bf16.mxu0 %v1537_v16  ;;  %v1587_v16 = vld [vmem:[#allocation5 + $0x2b4] ss:$24 sps:$4 sm:$0xff]  }
 0x100   : > { %1030 = vmatpush1.bf16.msra.mxu1 %v1536_v15  ;;  %v1582_v15 = vld [vmem:[#allocation5 + $0x280] ss:$24 sps:$4 sm:$0xff]  }
 0x101   : > { %1031 = vmatprep.subr.bf16.mxu1 %v1540_v17  ;;  %v1585_v17 = vld [vmem:[#allocation5 + $0x2b0] ss:$24 sps:$4 sm:$0xff]  }
 0x102   : > { %989 = vmatpush1.bf16.msra.mxu0 %v1539_v18  ;;  %v1590_v18 = vld [vmem:[#allocation5 + $0x2e4] ss:$24 sps:$4 sm:$0xff]  }
 0x103   : > { %1044 = vmatprep.subr.bf16.mxu0 %v1545_v20  ;;  %v458_v20 = vsub.s32 2, %v1976_v28 }
 0x104   : > { %1032 = vmatpush1.bf16.msra.mxu1 %v1542_v19  ;;  %v1588_v19 = vld [vmem:[#allocation5 + $0x2e0] ss:$24 sps:$4 sm:$0xff]  }
 0x181   : > { %v304_v21 = vpop.xlane.xlu1 %303 }
 0x182   : > { %v308_v22 = vmul.f32 0.00390625, %v304_v21  ;;  %v446_v21 = vld [vmem:[%s2072_s4] sm:$0x3f] }
 0x183   : > { %v455_v25 = vrot.slane %v446_v21, %v1979_v29 }
 0x184   : > { %v310_v23 = vadd.f32 1e-05, %v308_v22  ;;  %v462_v22 = vsub.s32 3, %v1976_v28 }
 0x185   : > { %v307_v24 = vpop.xlane.xlu1 %306 }
 0x186   : > { %1591 = vrsqrt.f32 %v310_v23  ;;  %v309_v26 = vmul.f32 0.00390625, %v307_v24  ;;  %v451_v23 = vrot.slane %v446_v21, %v1982_v30  ;;  %v459_v24 = vrot.slane %v446_v21, %v458_v20 }
 0x188   : > { %v311_v27 = vadd.f32 1e-05, %v309_v26  ;;  %v463_v26 = vrot.slane %v446_v21, %v462_v22 }
 0x18a   : > { %1593 = vrsqrt.f32 %v311_v27 }
 0x190   : > { %v1592_v32 = vpop.eup %1591 }
 0x191   : > { %v315_v34 = vmul.f32 %v1592_v32, %v1960_v46  ;;  %v314_v36 = vmul.f32 %v1592_v32, %v1957_v45 }
 0x193   : > { %v330_v42 = vmul.f32 %v326_v35, %v315_v34  ;;  %v329_v44 = vmul.f32 %v322_v37, %v314_v36 }
 0x194   : > { %v1594_v38 = vpop.eup %1593 }
 0x195   : > { %v317_v41 = vmul.f32 %v1594_v38, %v1970_v52  ;;  %v316_v43 = vmul.f32 %v1594_v38, %v1967_v51  ;;  %v345_v46 = vadd.f32 %v341_v39, %v330_v42  ;;  %v344_v50 = vadd.f32 %v337_v40, %v329_v44  ;;  %v1546_v51 = vld [vmem:[#allocation5 + $0x40] ss:$24 sps:$4 sm:$0xff]   ;;  %v1551_v52 = vld [vmem:[#allocation5 + $0x74] ss:$24 sps:$4 sm:$0xff]  }
 0x197   : > { %v332_v47 = vmul.f32 %v326_v35, %v317_v41  ;;  %v331_v48 = vmul.f32 %v322_v37, %v316_v43 }
 0x199   : > { %v347_v49 = vadd.f32 %v341_v39, %v332_v47  ;;  %v346_v53 = vadd.f32 %v337_v40, %v331_v48 }
 0x19b   : > { %v349_v45 = vpack.c.bf16 %v347_v49, %v345_v46  ;;  %v1998_v55 = vpack.c.bf16 %v346_v53, %v344_v50  ;;  %v466_v49 = vsub.s32 4, %v1976_v28  ;;  %v470_v50 = vsub.s32 5, %v1976_v28 }
 0x19d   : > { %990 = vmatprep.mubr.bf16.mxu0 %v349_v45  ;;  %1033 = vmatprep.mubr.bf16.mxu1 %v349_v45  ;;  %v467_v53 = vrot.slane %v446_v21, %v466_v49 }
 0x19e   : > { %991 = vmatmul.mubr.bf16.vlgmr.msra.gmra.mrb[0].mxu0 %v1998_v55  ;;  %1034 = vmatmul.mubr.bf16.vlgmr.msra.gmra.mrb[0].mxu1 %v1998_v55 }
 0x19f   : > { %1045 = vmatpush1.bf16.msra.mxu0 %v1543_v54  ;;  %1076 = vmatprep.mubr.bf16.mxu0 %v349_v45  ;;  %v471_v45 = vrot.slane %v446_v21, %v470_v50 }
 0x1a0   : > { %1046 = vmatprep.subr.bf16.mxu0 %v1548_v56 }
 0x1a3   : > { %1047 = vmatpush1.bf16.msra.mxu0 %v1546_v51 }
 0x1a4   : > { %1048 = vmatprep.subr.bf16.mxu0 %v1551_v52 }
 0x1a7   : > { %1049 = vmatpush1.bf16.msra.mxu0 %v1549_v57 }
 0x1a8   : > { %1050 = vmatprep.subr.bf16.mxu0 %v1554_v58 }
 0x1ab   : > { %1051 = vmatpush1.bf16.msra.mxu0 %v1552_v59 }
 0x1ac   : > { %1052 = vmatprep.subr.bf16.mxu0 %v1557_v60 }
 0x1af   : > { %1053 = vmatpush1.bf16.msra.mxu0 %v1555_v61 }
 0x1b0   : > { %1054 = vmatprep.subr.bf16.mxu0 %v1560_v62 }
 0x1b3   : > { %1055 = vmatpush1.bf16.msra.mxu0 %v1558_v63 }
 0x1b4   : > { %1056 = vmatprep.subr.bf16.mxu0 %v1563_v0 }
 0x1b7   : > { %1057 = vmatpush1.bf16.msra.mxu0 %v1561_v1 }
 0x1b8   : > { %1058 = vmatprep.subr.bf16.mxu0 %v1566_v2 }
 0x1bb   : > { %1059 = vmatpush1.bf16.msra.mxu0 %v1564_v3 }
 0x1bc   : > { %1060 = vmatprep.subr.bf16.mxu0 %v1569_v4 }
 0x1bf   : > { %1061 = vmatpush1.bf16.msra.mxu0 %v1567_v5 }
 0x1c0   : > { %1062 = vmatprep.subr.bf16.mxu0 %v1572_v6 }
 0x1c3   : > { %1063 = vmatpush1.bf16.msra.mxu0 %v1570_v7 }
 0x1c4   : > { %1064 = vmatprep.subr.bf16.mxu0 %v1575_v8 }
 0x1c7   : > { %1065 = vmatpush1.bf16.msra.mxu0 %v1573_v9 }
 0x1c8   : > { %1066 = vmatprep.subr.bf16.mxu0 %v1578_v10 }
 0x1cb   : > { %1067 = vmatpush1.bf16.msra.mxu0 %v1576_v11 }
 0x1cc   : > { %1068 = vmatprep.subr.bf16.mxu0 %v1581_v12 }
 0x1cf   : > { %1069 = vmatpush1.bf16.msra.mxu0 %v1579_v13 }
 0x1d0   : > { %1070 = vmatprep.subr.bf16.mxu0 %v1584_v14 }
 0x1d3   : > { %1071 = vmatpush1.bf16.msra.mxu0 %v1582_v15 }
 0x1d4   : > { %1072 = vmatprep.subr.bf16.mxu0 %v1587_v16 }
 0x1d7   : > { %1073 = vmatpush1.bf16.msra.mxu0 %v1585_v17 }
 0x1d8   : > { %1074 = vmatprep.subr.bf16.mxu0 %v1590_v18 }
 0x1db   : > { %1075 = vmatpush1.bf16.msra.mxu0 %v1588_v19 }
 0x1de   : > { %1077 = vmatmul.mubr.bf16.vlgmr.msra.gmra.mrb[4].mxu0 %v1998_v55 }
 0x271   : > { %v992_v27 = vpop.f32.mrb[0].mxu0  ;;  %v1035_v31 = vpop.f32.mrb[0].mxu1 }
 0x272   : > { %v993_v32 = vadd.f32 %v992_v27, %v451_v23  ;;  %v1036_v33 = vadd.f32 %v1035_v31, %v459_v24  ;;  %v994_v34 = vpop.f32.mrb[1].mxu0  ;;  %v1037_v35 = vpop.f32.mrb[1].mxu1 }
 0x273   : > { %v995_v36 = vadd.f32 %v994_v34, %v455_v25  ;;  %v1038_v37 = vadd.f32 %v1037_v35, %v463_v26  ;;  %v996_v38 = vpop.f32.mrb[2].mxu0  ;;  %v1039_v39 = vpop.f32.mrb[2].mxu1 }
 0x274   : > { %v997_v40 = vadd.f32 %v996_v38, %v451_v23  ;;  %v1040_v41 = vadd.f32 %v1039_v39, %v459_v24  ;;  %v998_v42 = vpop.f32.mrb[3].mxu0  ;;  %v1041_v43 = vpop.f32.mrb[3].mxu1 }
 0x275   : > { %v1360_v30 = vpack.c.bf16 %v995_v36, %v993_v32  ;;  %v1361_v44 = vpack.c.bf16 %v1038_v37, %v1036_v33  ;;  %v999_v47 = vadd.f32 %v998_v42, %v455_v25  ;;  %v1042_v29 = vadd.f32 %v1041_v43, %v463_v26 }
 0x277   : > { %1123 = vst [vmem:[%s276_s14] sm:$0xff] %v1360_v30  ;;  %1124 = vst [vmem:[%s276_s14 + $0x8] sm:$0xff] %v1361_v44  ;;  %v1363_v48 = vpack.c.bf16 %v999_v47, %v997_v40  ;;  %v1364_v46 = vpack.c.bf16 %v1042_v29, %v1040_v41 }
 0x279   : > { %1126 = vst [vmem:[%s276_s14 + $0x18] sm:$0xff] %v1363_v48  ;;  %1127 = vst [vmem:[%s276_s14 + $0x20] sm:$0xff] %v1364_v46 }
 0x2b1   : > { %v1078_v54 = vpop.f32.mrb[4].mxu0 }
 0x2b2   : > { %v1079_v55 = vadd.f32 %v1078_v54, %v467_v53  ;;  %v1080_v56 = vpop.f32.mrb[5].mxu0 }
 0x2b3   : > { %v1081_v51 = vadd.f32 %v1080_v56, %v471_v45  ;;  %v1082_v52 = vpop.f32.mrb[6].mxu0 }
 0x2b4   : > { %v1083_v57 = vadd.f32 %v1082_v52, %v467_v53  ;;  %v1084_v58 = vpop.f32.mrb[7].mxu0 }
 0x2b5   : > { %v1362_v59 = vpack.c.bf16 %v1081_v51, %v1079_v55  ;;  %v1085_v28 = vadd.f32 %v1084_v58, %v471_v45 }
 0x2b7   : > { %1125 = vst [vmem:[%s276_s14 + $0x10] sm:$0xff] %v1362_v59  ;;  %v1365_v60 = vpack.c.bf16 %v1085_v28, %v1083_v57 }
 0x2b9   : > { %1128 = vst [vmem:[%s276_s14 + $0x28] sm:$0xff] %v1365_v60 }
 0x2ba   : > { %1666 = shalt.err (!%p1663_p5)
}
 0x2bb   : > { %s1667_s25 = scalar_lea.hbm %s2019_s7, 768  ;;  %s1671_s11 = scalar_lea.hbm %s2073_s5, 1536 }
 0x2bc   : > { %p1668_p9 = scmp.ne.s32.totalorder %s2019_s7, %s1667_s25  ;;  %p1672_p3 = scmp.lt.u32.totalorder %s2019_s7, %s2073_s5 }
 0x2bd   : > { %p1673_p7 = scmp.lt.u32.totalorder %s1671_s11, %s1667_s25  ;;  %p1675_p13 = scmp.lt.u32.totalorder %s1667_s25, %s2019_s7 }
 0x2be   : > { %p1669_p1 = pnand %p1668_p9, %p1876_p10 }
 0x2bf   : > { %p1674_p4 = por %p1673_p7, %p1672_p3 }
 0x2c0   : > { %p1670_p2 = pneg %p1669_p1 }
 0x2c1   : > { %p1676_p6 = por %p1675_p13, %p1674_p4 }
 0x2c3   : > { %p1677_p8 = pnand %p1676_p6, %p1670_p2 }
 0x2c5   : > { %1680 = shalt.err (!%p1677_p8)
}
 0x2c6   : > { %s1748_s12 = smov 384   ;;  %s1749_s24 = smov 24  }
 0x2c7   : > { %1374 = dma.vmem_to_hbm [thread:$0]  (%p1876_p10), %s2014_s16, 768, %s2019_s7, %s1130_s21, %s1748_s12, %s1748_s12, %s1749_s24  }
 0x2c8 PF: > { %s1161_s27 = sand.u32 1, %s1719_s18   ;;  %p2091_p12 = scmp.ne.s32.totalorder %s2081_s29, 0 }
 0x2c9   : > { %p2092_p11 = scmp.ge.s32.totalorder %s1739_s23, 2  ;;  %s1162_s26 = scalar_lea.sflag [#allocation4], %s1161_s27 }
 0x2cb   : > { %p1385_p0 = pnand %p2092_p11, %p2091_p12 }
 0x2cd   : > { %1714 = dma.done.wait (!%p1385_p0), %s1162_s26, 768  }
 0x2ce   : > { %1716 = vsyncadd (!%p1385_p0), %s1162_s26, 4294966528  ;;  %s22_s23 = sadd.s32 1, %s1739_s23   ;;  %s2093_s18 = smov %s1723_s19 }
 0x2cf   : > { %p19_p5 = scmp.ge.s32.totalorder %s22_s23, 4   ;;  %s2094_s19 = smov %s1727_s20 }
 0x2d0   : > { %s2095_s20 = smov %s1885_s15  ;;  %s2096_s21 = smov %s1735_s22 }
 0x2d1   : > { %s2097_s22 = smov %s2099_s9  ;;  %21 = sbr.rel (!%p19_p5) target bundleno = 7 (0x7), region = 89 }
 0x2d8   :  { %1167 = vsyncpa [#allocation3], 1 }
 0x2d9   :  { %1169 = vsyncpa [#allocation3 + $0x1], 1 }
 0x2da   :  { %1170 = vsyncpa [#allocation6], 1 }
 0x2db   :  { %1171 = vsyncpa [#allocation4], 1 }
 0x2dc   :  { %1173 = vsyncpa [#allocation4 + $0x1], 1 }

</bundles_post_ra>
